<compile_context>
chip_gen: v7x
topology: tpu7x:2x2x1
jax: 0.10.0
libtpu: 0.0.40
codegen_flags: <defaults>
</compile_context>

<pallas_src>
import numpy as np
import jax
import jax.numpy as jnp
from jax.experimental import pallas as pl
from jax.experimental.pallas import tpu as pltpu


def _round_up(a, m):
    return -(-a // m) * m


def _pick_rows(h, w, target=512, cap=4096):
    """Row block Hb (divisor of h): Hb*w MXU-friendly, flat block multiple of 8."""
    divs = [d for d in range(1, h + 1) if h % d == 0]
    good = [d for d in divs if d == h or (d * w) % 8 == 0]
    ok = [d for d in good if d * w >= target]
    hb = ok[0] if ok else h
    if hb * w > cap:
        under = [d for d in good if d * w <= cap]
        if under:
            hb = under[-1]
    return hb


def _pick_upsample_rows(hi, wi, scale, target=512, cap=4096):
    """Source-row block His (divisor of hi): output rows per step = His*scale."""
    divs = [d for d in range(1, hi + 1) if hi % d == 0]
    good = [d for d in divs if d == hi or (d * wi) % 8 == 0]
    per = scale * scale * wi                     # output elems per source row
    ok = [d for d in good if d * per >= target]
    his = ok[0] if ok else hi
    if his * per > cap:
        under = [d for d in good if d * per <= cap]
        if under:
            his = under[-1]
    return his


# --------------------------------------------------------------------------------------
# Pallas kernels
# --------------------------------------------------------------------------------------
def _pw_kernel(x_ref, w_ref, b_ref, o_ref):
    # x: (bm, Cin), w: (Cin, F) bf16, b: (1, F) f32 -> o: (bm, F)
    y = jnp.dot(x_ref[...].astype(jnp.bfloat16), w_ref[...],
                preferred_element_type=jnp.float32)
    o_ref[...] = (y + b_ref[...]).astype(o_ref.dtype)


def _pw_add_kernel(x_ref, w_ref, b_ref, add_ref, o_ref):
    # Same as _pw_kernel with a fused residual add (f32 math).
    y = jnp.dot(x_ref[...].astype(jnp.bfloat16), w_ref[...],
                preferred_element_type=jnp.float32)
    o_ref[...] = (y + b_ref[...] + add_ref[...].astype(jnp.float32)).astype(o_ref.dtype)


def _dwsep_kernel(xt_ref, xm_ref, xb_ref, dww_ref, dwb_ref, pww_ref, pwb_ref, o_ref):
    # Fused depthwise(3x3, pad=1) + pointwise(1x1) on a block of Hb output rows,
    # processed as a flat (M = Hb*W, C) slab.
    #   xt/xb: (1, 1, W, C)  halo rows (clamped indices, masked below)
    #   xm:    (1, M, C)     body rows (flattened spatial)
    #   dww: (9, C) f32, dwb: (1, C) f32, pww: (C, F) bf16, pwb: (1, F) f32
    #   o:   (1, M, F)
    hb = pl.program_id(1)
    nhb = pl.num_programs(1)
    M = xm_ref.shape[1]
    C = xm_ref.shape[2]
    W = xt_ref.shape[2]

    top_keep = jnp.where(hb == 0, 0.0, 1.0)          # zero-pad above the image
    bot_keep = jnp.where(hb == nhb - 1, 0.0, 1.0)    # zero-pad below the image
    top = xt_ref[0, 0].astype(jnp.float32) * top_keep
    bot = xb_ref[0, 0].astype(jnp.float32) * bot_keep
    mid = xm_ref[0].astype(jnp.float32)
    zrow = jnp.zeros((1, C), jnp.float32)
    # band rows: [sentinel, halo row above, Hb body rows, halo row below, sentinel]
    band = jnp.concatenate([zrow, top, mid, bot, zrow], axis=0)   # (M + 2W + 2, C)

    # W-edge masks over the flattened output rows (left / right taps wrap otherwise).
    wpos = jax.lax.broadcasted_iota(jnp.int32, (M, 1), 0) % W
    left_ok = (wpos > 0).astype(jnp.float32)
    right_ok = (wpos < W - 1).astype(jnp.float32)
    edge_masks = (left_ok, None, right_ok)

    dww = dww_ref[...]                                            # (9, C)
    acc = jnp.zeros((M, C), jnp.float32)
    for dy in range(3):
        for dx in range(3):
            start = dy * W + dx
            tap = band[start:start + M, :] * dww[3 * dy + dx]
            m = edge_masks[dx]
            if m is not None:
                tap = tap * m
            acc = acc + tap
    acc = acc + dwb_ref[...]

    y = jnp.dot(acc.astype(jnp.bfloat16), pww_ref[...],
                preferred_element_type=jnp.float32)
    o_ref[0] = (y + pwb_ref[...]).astype(o_ref.dtype)


def _upsample_interp(b_ref, xt_ref, xm_ref, xb_ref):
    # b: (Hob*Wo, (His+2)*Wi) bf16 block-interp matrix (VMEM resident),
    # xt/xb: (1, 1, Wi, C) clamped halo source rows, xm: (1, His*Wi, C) body rows.
    band = jnp.concatenate([xt_ref[0, 0], xm_ref[0], xb_ref[0, 0]], axis=0)
    return jnp.dot(b_ref[...], band.astype(jnp.bfloat16),
                   preferred_element_type=jnp.float32)


def _upsample_kernel(b_ref, xt_ref, xm_ref, xb_ref, o_ref):
    o_ref[0] = _upsample_interp(b_ref, xt_ref, xm_ref, xb_ref).astype(o_ref.dtype)


def _upsample_add_kernel(b_ref, xt_ref, xm_ref, xb_ref, add_ref, o_ref):
    y = _upsample_interp(b_ref, xt_ref, xm_ref, xb_ref)
    o_ref[0] = (y + add_ref[0].astype(jnp.float32)).astype(o_ref.dtype)


# --------------------------------------------------------------------------------------
# Pallas wrappers
# --------------------------------------------------------------------------------------
def pointwise_conv1x1(x, w, b, add=None, bm=1024, out_dtype=jnp.bfloat16):
    """1x1 conv (NHWC): bf16 MXU matmul, f32 bias, optional fused residual add."""
    N, H, W, Cin = x.shape
    F = w.shape[1]
    M = N * H * W
    bm = min(bm, _round_up(M, 8))
    x2 = x.reshape(M, Cin)
    b2 = b.reshape(1, F)

    in_specs = [pl.BlockSpec((bm, Cin), lambda i: (i, 0)),
                pl.BlockSpec((Cin, F), lambda i: (0, 0)),
                pl.BlockSpec((1, F), lambda i: (0, 0))]
    args = [x2, w, b2]
    kernel = _pw_kernel
    if add is not None:
        in_specs.append(pl.BlockSpec((bm, F), lambda i: (i, 0)))
        args.append(add.reshape(M, F))
        kernel = _pw_add_kernel

    # NOTE: if M is not a multiple of bm the last block is ragged; its OOB output
    # rows are discarded (each matmul row is independent, so garbage stays local).
    out = pl.pallas_call(
        kernel,
        out_shape=jax.ShapeDtypeStruct((M, F), out_dtype),
        grid=(pl.cdiv(M, bm),),
        in_specs=in_specs,
        out_specs=pl.BlockSpec((bm, F), lambda i: (i, 0)),
        compiler_params=pltpu.CompilerParams(dimension_semantics=("parallel",)),
    )(*args)
    return out.reshape(N, H, W, F)


def dwsep_conv(x, p, out_dtype=jnp.bfloat16):
    """Fused DepthwiseSeparableConv: 3x3 depthwise (pad=1, bias) + 1x1 pointwise (bias)."""
    N, H, W, C = x.shape
    F = p["pw_w"].shape[1]
    Hb = _pick_rows(H, W)
    nhb = H // Hb
    xf = x.reshape(N, H * W, C)           # free reshape; flat body view

    out = pl.pallas_call(
        _dwsep_kernel,
        out_shape=jax.ShapeDtypeStruct((N, H * W, F), out_dtype),
        grid=(N, nhb),
        in_specs=[
            pl.BlockSpec((1, 1, W, C),
                         lambda n, hb: (n, jnp.maximum(hb * Hb - 1, 0), 0, 0)),
            pl.BlockSpec((1, Hb * W, C), lambda n, hb: (n, hb, 0)),
            pl.BlockSpec((1, 1, W, C),
                         lambda n, hb: (n, jnp.minimum(hb * Hb + Hb, H - 1), 0, 0)),
            pl.BlockSpec((9, C), lambda n, hb: (0, 0)),
            pl.BlockSpec((1, C), lambda n, hb: (0, 0)),
            pl.BlockSpec((C, F), lambda n, hb: (0, 0)),
            pl.BlockSpec((1, F), lambda n, hb: (0, 0)),
        ],
        out_specs=pl.BlockSpec((1, Hb * W, F), lambda n, hb: (n, hb, 0)),
        compiler_params=pltpu.CompilerParams(
            dimension_semantics=("parallel", "parallel")),
    )(x, xf, x, p["dw_w"], p["dw_b"], p["pw_w"], p["pw_b"])
    return out.reshape(N, H, W, F)


# ---- bilinear upsample (align_corners=False), block-interp matrix, fused add ----
_B_CACHE = {}


def _bilinear_matrix(in_size, scale):
    out_size = in_size * scale
    R = np.zeros((out_size, in_size), np.float32)
    for o in range(out_size):
        src = max((o + 0.5) / scale - 0.5, 0.0)
        i0 = min(int(np.floor(src)), in_size - 1)
        i1 = min(i0 + 1, in_size - 1)
        lam = np.float32(src - i0)
        R[o, i0] += 1.0 - lam
        R[o, i1] += lam
    return R


def _local_h_matrix(his, scale):
    # Block-local H interpolation onto a (His + 2)-row source band with halo rows
    # above/below; clamped (duplicated) halo rows make the unclamped weights exact
    # at the image edges as well.
    hob = his * scale
    L = np.zeros((hob, his + 2), np.float32)
    for r in range(hob):
        src = (r + 0.5) / scale - 0.5
        d = int(np.floor(src))
        lam = np.float32(src - d)
        L[r, d + 1] += 1.0 - lam
        L[r, d + 2] += lam
    return L


def _get_upsample_matrix(his, wi, scale):
    key = (his, wi, scale)
    if key not in _B_CACHE:
        B = np.kron(_local_h_matrix(his, scale), _bilinear_matrix(wi, scale))
        _B_CACHE[key] = jnp.asarray(B, jnp.bfloat16)   # weights exact in bf16 for 2x/4x
    return _B_CACHE[key]


def bilinear_upsample(x, scale, add=None, out_dtype=jnp.bfloat16):
    """Bilinear upsample by `scale` (2 or 4), optional fused residual add."""
    N, Hi, Wi, C = x.shape
    Ho, Wo = Hi * scale, Wi * scale
    His = _pick_upsample_rows(Hi, Wi, scale)
    Hob = His * scale
    nhb = Hi // His
    B = _get_upsample_matrix(His, Wi, scale)
    xf = x.reshape(N, Hi * Wi, C)

    in_specs = [
        pl.BlockSpec(B.shape, lambda n, hb: (0, 0)),
        pl.BlockSpec((1, 1, Wi, C),
                     lambda n, hb: (n, jnp.maximum(hb * His - 1, 0), 0, 0)),
        pl.BlockSpec((1, His * Wi, C), lambda n, hb: (n, hb, 0)),
        pl.BlockSpec((1, 1, Wi, C),
                     lambda n, hb: (n, jnp.minimum(hb * His + His, Hi - 1), 0, 0)),
    ]
    args = [B, x, xf, x]
    kernel = _upsample_kernel
    if add is not None:
        in_specs.append(pl.BlockSpec((1, Hob * Wo, C), lambda n, hb: (n, hb, 0)))
        args.append(add.reshape(N, Ho * Wo, C))
        kernel = _upsample_add_kernel

    out = pl.pallas_call(
        kernel,
        out_shape=jax.ShapeDtypeStruct((N, Ho * Wo, C), out_dtype),
        grid=(N, nhb),
        in_specs=in_specs,
        out_specs=pl.BlockSpec((1, Hob * Wo, C), lambda n, hb: (n, hb, 0)),
        compiler_params=pltpu.CompilerParams(
            dimension_semantics=("parallel", "parallel")),
    )(*args)
    return out.reshape(N, Ho, Wo, C)


# --------------------------------------------------------------------------------------
# FPN module (parameters + forward graph)
# --------------------------------------------------------------------------------------
def init_params(key, stage_channels, F):
    ks = iter(jax.random.split(key, 32))

    def conv1x1_params(cin):
        return dict(
            w=(0.1 * jax.random.normal(next(ks), (cin, F), jnp.float32)).astype(jnp.bfloat16),
            b=0.05 * jax.random.normal(next(ks), (F,), jnp.float32))

    def dwsep_params(cin):
        return dict(
            dw_w=0.1 * jax.random.normal(next(ks), (9, cin), jnp.float32),
            dw_b=0.05 * jax.random.normal(next(ks), (1, cin), jnp.float32),
            pw_w=(0.1 * jax.random.normal(next(ks), (cin, F), jnp.float32)).astype(jnp.bfloat16),
            pw_b=0.05 * jax.random.normal(next(ks), (1, F), jnp.float32))

    s3c, s5c, s7c, s9c = stage_channels
    return dict(lat3=conv1x1_params(s3c), lat5=conv1x1_params(s5c),
                lat7=conv1x1_params(s7c), lat9=conv1x1_params(s9c),
                conv3x3=dwsep_params(F), p10=dwsep_params(s9c))


class FeaturePyramidNetworkPallas:
    def __init__(self, out_channels_per_stage_level=(24, 80, 192, 1280),
                 feature_size=256, *, key):
        self.params = init_params(key, out_channels_per_stage_level, feature_size)

    def __call__(self, stage_outputs_as_inputs):
        if not isinstance(stage_outputs_as_inputs, list):
            raise TypeError("stage_outputs_as_input must be a list and contain 4 elements.")
        S3, S5, S7, S9 = stage_outputs_as_inputs
        p = self.params

        P10 = dwsep_conv(S9, p["p10"], out_dtype=jnp.float32)
        P9 = dwsep_conv(pointwise_conv1x1(S9, p["lat9"]["w"], p["lat9"]["b"]),
                        p["conv3x3"], out_dtype=jnp.float32)
        P7 = dwsep_conv(pointwise_conv1x1(S7, p["lat7"]["w"], p["lat7"]["b"], add=P9),
                        p["conv3x3"])
        lat5 = pointwise_conv1x1(S5, p["lat5"]["w"], p["lat5"]["b"])
        P5 = dwsep_conv(bilinear_upsample(P7, 2, add=lat5), p["conv3x3"])
        lat3 = pointwise_conv1x1(S3, p["lat3"]["w"], p["lat3"]["b"])
        P3 = dwsep_conv(bilinear_upsample(P5, 4, add=lat3), p["conv3x3"],
                        out_dtype=jnp.float32)
        P5_out = bilinear_upsample(P5, 2, out_dtype=jnp.float32)
        P7_out = bilinear_upsample(P7, 2, out_dtype=jnp.float32)
        return (P3, P5_out, P7_out, P9, P10)


# --------------------------------------------------------------------------------------
# Pure-f32 numpy reference (kernels use bf16 MXU inputs / bf16 intermediates with f32
# accumulation, hence the 2e-2 comparison tolerance below).
# --------------------------------------------------------------------------------------
def _to_np_f32(a):
    return np.asarray(jnp.asarray(a, dtype=jnp.float32))


def _np_pointwise(x, w, b, add=None):
    out = np.einsum("nhwc,cf->nhwf", np.asarray(x, np.float32), _to_np_f32(w))
    out = out + _to_np_f32(b).reshape(1, 1, 1, -1)
    if add is not None:
        out = out + np.asarray(add, np.float32)
    return out.astype(np.float32)


def _np_dwsep(x, p):
    x = np.asarray(x, np.float32)
    N, H, W, C = x.shape
    xp = np.pad(x, ((0, 0), (1, 1), (1, 1), (0, 0)))
    dww = _to_np_f32(p["dw_w"])            # (9, C)
    acc = np.zeros_like(x)
    for dy in range(3):
        for dx in range(3):
            acc = acc + xp[:, dy:dy + H, dx:dx + W, :] * dww[3 * dy + dx].reshape(1, 1, 1, C)
    acc = acc + _to_np_f32(p["dw_b"]).reshape(1, 1, 1, C)
    return _np_pointwise(acc, p["pw_w"], p["pw_b"])


def _np_upsample(x, scale, add=None):
    x = np.asarray(x, np.float32)
    N, Hi, Wi, C = x.shape
    Rw = _bilinear_matrix(Wi, scale)
    Rh = _bilinear_matrix(Hi, scale)
    t = np.einsum("pw,nhwc->nhpc", Rw, x)
    out = np.einsum("qh,nhpc->nqpc", Rh, t).astype(np.float32)
    if add is not None:
        out = out + np.asarray(add, np.float32)
    return out


def _np_forward(params, stages):
    S3, S5, S7, S9 = stages
    p = params
    P10 = _np_dwsep(S9, p["p10"])
    P9 = _np_dwsep(_np_pointwise(S9, p["lat9"]["w"], p["lat9"]["b"]), p["conv3x3"])
    P7 = _np_dwsep(_np_pointwise(S7, p["lat7"]["w"], p["lat7"]["b"], add=P9), p["conv3x3"])
    lat5 = _np_pointwise(S5, p["lat5"]["w"], p["lat5"]["b"])
    P5 = _np_dwsep(_np_upsample(P7, 2, add=lat5), p["conv3x3"])
    lat3 = _np_pointwise(S3, p["lat3"]["w"], p["lat3"]["b"])
    P3 = _np_dwsep(_np_upsample(P5, 4, add=lat3), p["conv3x3"])
    return (P3, _np_upsample(P5, 2), _np_upsample(P7, 2), P9, P10)


# --------------------------------------------------------------------------------------
if __name__ == "__main__":
    key = jax.random.PRNGKey(0)
    k_in = jax.random.split(key, 5)

    # Small, shape-consistent stage outputs (NHWC): S3 = 4x S5, S5 = 2x S7, S9 same as S7.
    stage_channels = (8, 16, 24, 32)
    feature_size = 128
    N = 2
    S3 = jax.random.normal(k_in[0], (N, 32, 32, stage_channels[0]), jnp.float32)
    S5 = jax.random.normal(k_in[1], (N, 8, 8, stage_channels[1]), jnp.float32)
    S7 = jax.random.normal(k_in[2], (N, 4, 4, stage_channels[2]), jnp.float32)
    S9 = jax.random.normal(k_in[3], (N, 4, 4, stage_channels[3]), jnp.float32)

    fpn = FeaturePyramidNetworkPallas(stage_channels, feature_size, key=k_in[4])

    outs = jax.block_until_ready(fpn([S3, S5, S7, S9]))

    refs = _np_forward(fpn.params, [np.asarray(S3), np.asarray(S5),
                                    np.asarray(S7), np.asarray(S9)])
    expected_shapes = [(N, 32, 32, feature_size),   # P_3
                       (N, 16, 16, feature_size),   # P_5 (after final 2x upsample)
                       (N, 8, 8, feature_size),     # P_7 (after final 2x upsample)
                       (N, 4, 4, feature_size),     # P_9
                       (N, 4, 4, feature_size)]     # P_10
    names = ["P_3", "P_5", "P_7", "P_9", "P_10"]
    for name, out, ref, shp in zip(names, outs, refs, expected_shapes):
        assert out.shape == shp, f"{name}: {out.shape} vs {shp}"
        # 2e-2 tolerance: bf16-in / f32-accumulate MXU matmuls and bf16-stored
        # inter-kernel intermediates vs. a pure-f32 reference.
        np.testing.assert_allclose(np.asarray(out.astype(jnp.float32)), ref,
                                   rtol=2e-2, atol=2e-2,
                                   err_msg=f"mismatch in {name}")

    print("KERNEL_OK")
</pallas_src>

<mosaic_0001>
module attributes {stable_mosaic.version = 11 : i64} {
  func.func @_dwsep_kernel(%arg0: i32, %arg1: i32, %arg2: memref<1x1x4x32xf32, #tpu.memory_space<vmem>>, %arg3: memref<1x16x32xf32, #tpu.memory_space<vmem>>, %arg4: memref<1x1x4x32xf32, #tpu.memory_space<vmem>>, %arg5: memref<9x32xf32, #tpu.memory_space<vmem>>, %arg6: memref<1x32xf32, #tpu.memory_space<vmem>>, %arg7: memref<32x128xbf16, #tpu.memory_space<vmem>>, %arg8: memref<1x128xf32, #tpu.memory_space<vmem>>, %arg9: memref<1x16x128xf32, #tpu.memory_space<vmem>>) attributes {dimension_semantics = [#tpu.dimension_semantics<parallel>, #tpu.dimension_semantics<parallel>], iteration_bounds = array<i64: 2, 1>, scalar_prefetch = 0 : i64, scratch_operands = 0 : i64, tpu.core_type = #tpu.core_type<tc>, window_params = [{transform_indices = @transform_0, window_bounds = array<i64: 1, 1, 4, 32>}, {transform_indices = @transform_1, window_bounds = array<i64: 1, 16, 32>}, {transform_indices = @transform_2, window_bounds = array<i64: 1, 1, 4, 32>}, {pipeline_mode = #tpu.pipeline_mode<synchronous>, transform_indices = @transform_3, window_bounds = array<i64: 9, 32>}, {pipeline_mode = #tpu.pipeline_mode<synchronous>, transform_indices = @transform_4, window_bounds = array<i64: 1, 32>}, {pipeline_mode = #tpu.pipeline_mode<synchronous>, transform_indices = @transform_5, window_bounds = array<i64: 32, 128>}, {pipeline_mode = #tpu.pipeline_mode<synchronous>, transform_indices = @transform_6, window_bounds = array<i64: 1, 128>}, {transform_indices = @transform_7, window_bounds = array<i64: 1, 16, 128>}]} {
    %c0_i32 = arith.constant 0 : i32
    %0 = arith.cmpi eq, %arg1, %c0_i32 : i32
    %cst = arith.constant 0.000000e+00 : f32
    %cst_0 = arith.constant 1.000000e+00 : f32
    %1 = arith.select %0, %cst, %cst_0 : f32
    %c0_i32_1 = arith.constant 0 : i32
    %2 = arith.cmpi eq, %arg1, %c0_i32_1 : i32
    %cst_2 = arith.constant 0.000000e+00 : f32
    %cst_3 = arith.constant 1.000000e+00 : f32
    %3 = arith.select %2, %cst_2, %cst_3 : f32
    %c0 = arith.constant 0 : index
    %c0_4 = arith.constant 0 : index
    %c0_5 = arith.constant 0 : index
    %c0_6 = arith.constant 0 : index
    %4 = vector.load %arg2[%c0, %c0_4, %c0_5, %c0_6] : memref<1x1x4x32xf32, #tpu.memory_space<vmem>>, vector<1x1x4x32xf32>
    %5 = vector.shape_cast %4 : vector<1x1x4x32xf32> to vector<4x32xf32>
    %6 = vector.broadcast %1 : f32 to vector<4x32xf32>
    %7 = arith.mulf %5, %6 : vector<4x32xf32>
    %c0_7 = arith.constant 0 : index
    %c0_8 = arith.constant 0 : index
    %c0_9 = arith.constant 0 : index
    %c0_10 = arith.constant 0 : index
    %8 = vector.load %arg4[%c0_7, %c0_8, %c0_9, %c0_10] : memref<1x1x4x32xf32, #tpu.memory_space<vmem>>, vector<1x1x4x32xf32>
    %9 = vector.shape_cast %8 : vector<1x1x4x32xf32> to vector<4x32xf32>
    %10 = vector.broadcast %3 : f32 to vector<4x32xf32>
    %11 = arith.mulf %9, %10 : vector<4x32xf32>
    %c0_11 = arith.constant 0 : index
    %c0_12 = arith.constant 0 : index
    %c0_13 = arith.constant 0 : index
    %12 = vector.load %arg3[%c0_11, %c0_12, %c0_13] : memref<1x16x32xf32, #tpu.memory_space<vmem>>, vector<1x16x32xf32>
    %13 = vector.shape_cast %12 : vector<1x16x32xf32> to vector<16x32xf32>
    %cst_14 = arith.constant 0.000000e+00 : f32
    %14 = vector.broadcast %cst_14 : f32 to vector<1x32xf32>
    %15 = tpu.concatenate %14, %7, %13, %11, %14 in 0 : vector<1x32xf32>, vector<4x32xf32>, vector<16x32xf32>, vector<4x32xf32>, vector<1x32xf32> -> vector<26x32xf32>
    %16 = tpu.iota {dimensions = array<i32: 0>} : vector<16x1xi32>
    %c4_i32 = arith.constant 4 : i32
    %c0_i32_15 = arith.constant 0 : i32
    %17 = arith.cmpi eq, %c4_i32, %c0_i32_15 : i32
    %c1_i32 = arith.constant 1 : i32
    %18 = arith.select %17, %c1_i32, %c4_i32 : i32
    %19 = vector.broadcast %18 : i32 to vector<16x1xi32>
    %20 = arith.remsi %16, %19 : vector<16x1xi32>
    %c0_i32_16 = arith.constant 0 : i32
    %21 = vector.broadcast %c0_i32_16 : i32 to vector<16x1xi32>
    %22 = arith.cmpi ne, %20, %21 : vector<16x1xi32>
    %c0_i32_17 = arith.constant 0 : i32
    %23 = vector.broadcast %c0_i32_17 : i32 to vector<16x1xi32>
    %24 = arith.cmpi slt, %20, %23 : vector<16x1xi32>
    %c0_i32_18 = arith.constant 0 : i32
    %25 = arith.cmpi slt, %18, %c0_i32_18 : i32
    %26 = vector.broadcast %25 : i1 to vector<16x1xi1>
    %27 = vector.broadcast %26 : vector<16x1xi1> to vector<16x1xi1>
    %28 = arith.xori %24, %27 : vector<16x1xi1>
    %29 = arith.andi %28, %22 : vector<16x1xi1>
    %30 = vector.broadcast %18 : i32 to vector<16x1xi32>
    %31 = arith.addi %20, %30 : vector<16x1xi32>
    %32 = arith.select %29, %31, %20 : vector<16x1xi1>, vector<16x1xi32>
    %c0_i32_19 = arith.constant 0 : i32
    %33 = vector.broadcast %c0_i32_19 : i32 to vector<16x1xi32>
    %34 = arith.cmpi sgt, %32, %33 : vector<16x1xi32>
    %35 = arith.extui %34 : vector<16x1xi1> to vector<16x1xi32>
    %36 = arith.sitofp %35 : vector<16x1xi32> to vector<16x1xf32>
    %c3_i32 = arith.constant 3 : i32
    %37 = vector.broadcast %c3_i32 : i32 to vector<16x1xi32>
    %38 = arith.cmpi slt, %32, %37 : vector<16x1xi32>
    %39 = arith.extui %38 : vector<16x1xi1> to vector<16x1xi32>
    %40 = arith.sitofp %39 : vector<16x1xi32> to vector<16x1xf32>
    %c0_20 = arith.constant 0 : index
    %c0_21 = arith.constant 0 : index
    %41 = vector.load %arg5[%c0_20, %c0_21] : memref<9x32xf32, #tpu.memory_space<vmem>>, vector<9x32xf32>
    %cst_22 = arith.constant 0.000000e+00 : f32
    %42 = vector.broadcast %cst_22 : f32 to vector<16x32xf32>
    %43 = vector.extract_strided_slice %15 {offsets = [0, 0], sizes = [16, 32], strides = [1, 1]} : vector<26x32xf32> to vector<16x32xf32>
    %44 = vector.extract_strided_slice %41 {offsets = [0, 0], sizes = [1, 32], strides = [1, 1]} : vector<9x32xf32> to vector<1x32xf32>
    %45 = vector.shape_cast %44 : vector<1x32xf32> to vector<32xf32>
    %46 = vector.shape_cast %45 : vector<32xf32> to vector<1x32xf32>
    %47 = vector.broadcast %46 : vector<1x32xf32> to vector<16x32xf32>
    %48 = arith.mulf %43, %47 : vector<16x32xf32>
    %49 = vector.broadcast %36 : vector<16x1xf32> to vector<16x32xf32>
    %50 = arith.mulf %48, %49 : vector<16x32xf32>
    %51 = arith.addf %42, %50 : vector<16x32xf32>
    %52 = vector.extract_strided_slice %15 {offsets = [1, 0], sizes = [16, 32], strides = [1, 1]} : vector<26x32xf32> to vector<16x32xf32>
    %53 = vector.extract_strided_slice %41 {offsets = [1, 0], sizes = [1, 32], strides = [1, 1]} : vector<9x32xf32> to vector<1x32xf32>
    %54 = vector.shape_cast %53 : vector<1x32xf32> to vector<32xf32>
    %55 = vector.shape_cast %54 : vector<32xf32> to vector<1x32xf32>
    %56 = vector.broadcast %55 : vector<1x32xf32> to vector<16x32xf32>
    %57 = arith.mulf %52, %56 : vector<16x32xf32>
    %58 = arith.addf %51, %57 : vector<16x32xf32>
    %59 = vector.extract_strided_slice %15 {offsets = [2, 0], sizes = [16, 32], strides = [1, 1]} : vector<26x32xf32> to vector<16x32xf32>
    %60 = vector.extract_strided_slice %41 {offsets = [2, 0], sizes = [1, 32], strides = [1, 1]} : vector<9x32xf32> to vector<1x32xf32>
    %61 = vector.shape_cast %60 : vector<1x32xf32> to vector<32xf32>
    %62 = vector.shape_cast %61 : vector<32xf32> to vector<1x32xf32>
    %63 = vector.broadcast %62 : vector<1x32xf32> to vector<16x32xf32>
    %64 = arith.mulf %59, %63 : vector<16x32xf32>
    %65 = vector.broadcast %40 : vector<16x1xf32> to vector<16x32xf32>
    %66 = arith.mulf %64, %65 : vector<16x32xf32>
    %67 = arith.addf %58, %66 : vector<16x32xf32>
    %68 = vector.extract_strided_slice %15 {offsets = [4, 0], sizes = [16, 32], strides = [1, 1]} : vector<26x32xf32> to vector<16x32xf32>
    %69 = vector.extract_strided_slice %41 {offsets = [3, 0], sizes = [1, 32], strides = [1, 1]} : vector<9x32xf32> to vector<1x32xf32>
    %70 = vector.shape_cast %69 : vector<1x32xf32> to vector<32xf32>
    %71 = vector.shape_cast %70 : vector<32xf32> to vector<1x32xf32>
    %72 = vector.broadcast %71 : vector<1x32xf32> to vector<16x32xf32>
    %73 = arith.mulf %68, %72 : vector<16x32xf32>
    %74 = vector.broadcast %36 : vector<16x1xf32> to vector<16x32xf32>
    %75 = arith.mulf %73, %74 : vector<16x32xf32>
    %76 = arith.addf %67, %75 : vector<16x32xf32>
    %77 = vector.extract_strided_slice %15 {offsets = [5, 0], sizes = [16, 32], strides = [1, 1]} : vector<26x32xf32> to vector<16x32xf32>
    %78 = vector.extract_strided_slice %41 {offsets = [4, 0], sizes = [1, 32], strides = [1, 1]} : vector<9x32xf32> to vector<1x32xf32>
    %79 = vector.shape_cast %78 : vector<1x32xf32> to vector<32xf32>
    %80 = vector.shape_cast %79 : vector<32xf32> to vector<1x32xf32>
    %81 = vector.broadcast %80 : vector<1x32xf32> to vector<16x32xf32>
    %82 = arith.mulf %77, %81 : vector<16x32xf32>
    %83 = arith.addf %76, %82 : vector<16x32xf32>
    %84 = vector.extract_strided_slice %15 {offsets = [6, 0], sizes = [16, 32], strides = [1, 1]} : vector<26x32xf32> to vector<16x32xf32>
    %85 = vector.extract_strided_slice %41 {offsets = [5, 0], sizes = [1, 32], strides = [1, 1]} : vector<9x32xf32> to vector<1x32xf32>
    %86 = vector.shape_cast %85 : vector<1x32xf32> to vector<32xf32>
    %87 = vector.shape_cast %86 : vector<32xf32> to vector<1x32xf32>
    %88 = vector.broadcast %87 : vector<1x32xf32> to vector<16x32xf32>
    %89 = arith.mulf %84, %88 : vector<16x32xf32>
    %90 = vector.broadcast %40 : vector<16x1xf32> to vector<16x32xf32>
    %91 = arith.mulf %89, %90 : vector<16x32xf32>
    %92 = arith.addf %83, %91 : vector<16x32xf32>
    %93 = vector.extract_strided_slice %15 {offsets = [8, 0], sizes = [16, 32], strides = [1, 1]} : vector<26x32xf32> to vector<16x32xf32>
    %94 = vector.extract_strided_slice %41 {offsets = [6, 0], sizes = [1, 32], strides = [1, 1]} : vector<9x32xf32> to vector<1x32xf32>
    %95 = vector.shape_cast %94 : vector<1x32xf32> to vector<32xf32>
    %96 = vector.shape_cast %95 : vector<32xf32> to vector<1x32xf32>
    %97 = vector.broadcast %96 : vector<1x32xf32> to vector<16x32xf32>
    %98 = arith.mulf %93, %97 : vector<16x32xf32>
    %99 = vector.broadcast %36 : vector<16x1xf32> to vector<16x32xf32>
    %100 = arith.mulf %98, %99 : vector<16x32xf32>
    %101 = arith.addf %92, %100 : vector<16x32xf32>
    %102 = vector.extract_strided_slice %15 {offsets = [9, 0], sizes = [16, 32], strides = [1, 1]} : vector<26x32xf32> to vector<16x32xf32>
    %103 = vector.extract_strided_slice %41 {offsets = [7, 0], sizes = [1, 32], strides = [1, 1]} : vector<9x32xf32> to vector<1x32xf32>
    %104 = vector.shape_cast %103 : vector<1x32xf32> to vector<32xf32>
    %105 = vector.shape_cast %104 : vector<32xf32> to vector<1x32xf32>
    %106 = vector.broadcast %105 : vector<1x32xf32> to vector<16x32xf32>
    %107 = arith.mulf %102, %106 : vector<16x32xf32>
    %108 = arith.addf %101, %107 : vector<16x32xf32>
    %109 = vector.extract_strided_slice %15 {offsets = [10, 0], sizes = [16, 32], strides = [1, 1]} : vector<26x32xf32> to vector<16x32xf32>
    %110 = vector.extract_strided_slice %41 {offsets = [8, 0], sizes = [1, 32], strides = [1, 1]} : vector<9x32xf32> to vector<1x32xf32>
    %111 = vector.shape_cast %110 : vector<1x32xf32> to vector<32xf32>
    %112 = vector.shape_cast %111 : vector<32xf32> to vector<1x32xf32>
    %113 = vector.broadcast %112 : vector<1x32xf32> to vector<16x32xf32>
    %114 = arith.mulf %109, %113 : vector<16x32xf32>
    %115 = vector.broadcast %40 : vector<16x1xf32> to vector<16x32xf32>
    %116 = arith.mulf %114, %115 : vector<16x32xf32>
    %117 = arith.addf %108, %116 : vector<16x32xf32>
    %c0_23 = arith.constant 0 : index
    %c0_24 = arith.constant 0 : index
    %118 = vector.load %arg6[%c0_23, %c0_24] : memref<1x32xf32, #tpu.memory_space<vmem>>, vector<1x32xf32>
    %119 = vector.broadcast %118 : vector<1x32xf32> to vector<16x32xf32>
    %120 = arith.addf %117, %119 : vector<16x32xf32>
    %121 = arith.truncf %120 : vector<16x32xf32> to vector<16x32xbf16>
    %c0_25 = arith.constant 0 : index
    %c0_26 = arith.constant 0 : index
    %122 = vector.load %arg7[%c0_25, %c0_26] : memref<32x128xbf16, #tpu.memory_space<vmem>>, vector<32x128xbf16>
    %cst_27 = arith.constant dense<0.000000e+00> : vector<16x128xf32>
    %123 = tpu.matmul %121, %122, %cst_27 {dimension_numbers = #tpu.dot_dimension_numbers<[1], [0], [0], [1], [0, 0, 1, 1], [], []>} : vector<16x32xbf16>, vector<32x128xbf16>, vector<16x128xf32> -> vector<16x128xf32>
    %c0_28 = arith.constant 0 : index
    %c0_29 = arith.constant 0 : index
    %124 = vector.load %arg8[%c0_28, %c0_29] : memref<1x128xf32, #tpu.memory_space<vmem>>, vector<1x128xf32>
    %125 = vector.broadcast %124 : vector<1x128xf32> to vector<16x128xf32>
    %126 = arith.addf %123, %125 : vector<16x128xf32>
    %c0_30 = arith.constant 0 : index
    %c0_31 = arith.constant 0 : index
    %c0_32 = arith.constant 0 : index
    %127 = vector.load %arg9[%c0_30, %c0_31, %c0_32] : memref<1x16x128xf32, #tpu.memory_space<vmem>>, vector<1x16x128xf32>
    %128 = vector.shape_cast %127 : vector<1x16x128xf32> to vector<16x128xf32>
    %129 = vector.shape_cast %126 : vector<16x128xf32> to vector<1x16x128xf32>
    tpu.vector_store %arg9[%c0_30, %c0_31, %c0_32], %129 {strides = array<i32>} : memref<1x16x128xf32, #tpu.memory_space<vmem>>, vector<1x16x128xf32>,
    return
  }
  func.func @transform_0(%arg0: i32, %arg1: i32) -> (i32, i32, i32, i32) {
    %c4_i32 = arith.constant 4 : i32
    %0 = arith.muli %arg1, %c4_i32 : i32
    %c1_i32 = arith.constant 1 : i32
    %1 = arith.subi %0, %c1_i32 : i32
    %c0_i32 = arith.constant 0 : i32
    %2 = arith.maxsi %1, %c0_i32 : i32
    %c0_i32_0 = arith.constant 0 : i32
    %c0_i32_1 = arith.constant 0 : i32
    %c0_i32_2 = arith.constant 0 : i32
    return %arg0, %2, %c0_i32_0, %c0_i32_1 : i32, i32, i32, i32
  }
  func.func @transform_1(%arg0: i32, %arg1: i32) -> (i32, i32, i32) {
    %c0_i32 = arith.constant 0 : i32
    %c0_i32_0 = arith.constant 0 : i32
    return %arg0, %arg1, %c0_i32 : i32, i32, i32
  }
  func.func @transform_2(%arg0: i32, %arg1: i32) -> (i32, i32, i32, i32) {
    %c4_i32 = arith.constant 4 : i32
    %0 = arith.muli %arg1, %c4_i32 : i32
    %c4_i32_0 = arith.constant 4 : i32
    %1 = arith.addi %0, %c4_i32_0 : i32
    %c3_i32 = arith.constant 3 : i32
    %2 = arith.minsi %1, %c3_i32 : i32
    %c0_i32 = arith.constant 0 : i32
    %c0_i32_1 = arith.constant 0 : i32
    %c0_i32_2 = arith.constant 0 : i32
    return %arg0, %2, %c0_i32, %c0_i32_1 : i32, i32, i32, i32
  }
  func.func @transform_3(%arg0: i32, %arg1: i32) -> (i32, i32) {
    %c0_i32 = arith.constant 0 : i32
    %c0_i32_0 = arith.constant 0 : i32
    %c0_i32_1 = arith.constant 0 : i32
    return %c0_i32, %c0_i32_0 : i32, i32
  }
  func.func @transform_4(%arg0: i32, %arg1: i32) -> (i32, i32) {
    %c0_i32 = arith.constant 0 : i32
    %c0_i32_0 = arith.constant 0 : i32
    %c0_i32_1 = arith.constant 0 : i32
    return %c0_i32, %c0_i32_0 : i32, i32
  }
  func.func @transform_5(%arg0: i32, %arg1: i32) -> (i32, i32) {
    %c0_i32 = arith.constant 0 : i32
    %c0_i32_0 = arith.constant 0 : i32
    %c0_i32_1 = arith.constant 0 : i32
    return %c0_i32, %c0_i32_0 : i32, i32
  }
  func.func @transform_6(%arg0: i32, %arg1: i32) -> (i32, i32) {
    %c0_i32 = arith.constant 0 : i32
    %c0_i32_0 = arith.constant 0 : i32
    %c0_i32_1 = arith.constant 0 : i32
    return %c0_i32, %c0_i32_0 : i32, i32
  }
  func.func @transform_7(%arg0: i32, %arg1: i32) -> (i32, i32, i32) {
    %c0_i32 = arith.constant 0 : i32
    %c0_i32_0 = arith.constant 0 : i32
    return %arg0, %arg1, %c0_i32 : i32, i32, i32
  }
}

</mosaic_0001>

<bundles_post_ra>
// kernel: tpu_custom_call.1
= control target key start
LH: loop header
LB: loop body
LE: loop exit
PB: predicated region body
PF: predicated region fallthrough
CT: control target
= control target key end

     0   :  { %s1780_s0 = inlined_call_operand.hbm [shape: f32[2,4,4,32], index: 0, kind: input, shape index: {}]   ;;  %s1781_s1 = inlined_call_operand.hbm [shape: f32[2,16,32], index: 1, kind: input, shape index: {}]   ;;  %s1782_s2 = inlined_call_operand.hbm [shape: f32[2,4,4,32], index: 2, kind: input, shape index: {}]   ;;  %s1783_s3 = inlined_call_operand.hbm [shape: f32[9,32], index: 3, kind: input, shape index: {}]   ;;  %s1784_s4 = inlined_call_operand.vmem [shape: f32[1,32], index: 4, kind: input, shape index: {}]   ;;  %s1785_s5 = inlined_call_operand.vmem [shape: bf16[32,128], index: 5, kind: input, shape index: {}]   ;;  %s1786_s6 = inlined_call_operand.vmem [shape: f32[1,128], index: 6, kind: input, shape index: {}]   ;;  %s1787_s7 = inlined_call_operand.hbm [shape: f32[2,16,128], index: 7, kind: output, shape index: {}]  }
   0x1   :  { %1808 = sst [smem:[#allocation22_spill]] %s1781_s1 }
   0x2   :  { %1809 = sst [smem:[#allocation23_spill]] %s1787_s7 }
   0x3   :  { %12 = vsyncpa [#allocation3], 0 }
   0x4   :  { %14 = vsyncpa [#allocation3 + $0x1], 0 }
   0x5   :  { %15 = vsyncpa [#allocation6], 0 }
   0x6   :  { %17 = vsyncpa [#allocation6 + $0x1], 0 }
   0x7   :  { %18 = vsyncpa [#allocation9], 0 }
   0x8   :  { %19 = vsyncpa [#allocation4], 0 }
   0x9   :  { %21 = vsyncpa [#allocation4 + $0x1], 0  ;;  %s1350_s24 = smov 0   ;;  %s1352_s25 = smov 0  }
   0xa   :  { %s1354_s26 = smov 0   ;;  %s1356_s27 = smov 0  }
   0xb   :  { %s1358_s28 = smov 0   ;;  %s1360_s29 = smov 0  }
   0xc LB: > { %1810 = sst [smem:[#allocation15_spill]] %s1277_s24  ;;  %s39_s30 = sadd.s32 1, %s1293_s28  ;;  %s1297_s29 = sphi %s1360_s29, %s27_s29   ;;  %s1293_s28 = sphi %s1358_s28, %s1848_s28   ;;  %s1289_s27 = sphi %s1356_s27, %s1852_s27   ;;  %s1285_s26 = sphi %s1354_s26, %s1851_s26   ;;  %s1281_s25 = sphi %s1352_s25, %s1850_s25   ;;  %s1277_s24 = sphi %s1350_s24, %s1849_s24  }
   0xd   : > { %1811 = sst [smem:[#allocation16_spill]] %s1285_s26  ;;  %s56_s8 = sadd.s32 1, %s1285_s26 }
   0xe   : > { %1812 = sst [smem:[#allocation17_spill]] %s1293_s28  ;;  %p41_p0 = scmp.ge.s32.totalorder %s39_s30, 2 }
   0xf   : > { %1813 = sst [smem:[#allocation18_spill]] %s1297_s29  ;;  %p1788_p1 = scmp.ne.s32.totalorder %s1285_s26, %s1281_s25 }
  0x10   : > { %p64_p2 = scmp.eq.s32.totalorder %s1297_s29, 0  ;;  %s1854_s30 = smov (%p41_p0, %s39_s30), 0 }
  0x11   : > { %1814 = sst [smem:[#allocation19_spill]] %s1854_s30  ;;  %s51_s9 = ssub.s32 %s1293_s28, %s1854_s30 }
  0x12   : > { %p65_p3 = por %p64_p2, %p1788_p1  ;;  %p54_p5 = scmp.eq.s32.totalorder %s51_s9, 0 }
  0x13   : > { %p1029_p6 = scmp.lt.s32.totalorder %s1297_s29, 2  ;;  %s1395_s10 = sand.u32 1, %s1285_s26  }
  0x14   : > { %s1398_s11 = sshll.u32 %s1293_s28, 8  ;;  %s315_s14 = sand.u32 1, %s1297_s29  }
  0x15   : > { %s1401_s12 = scalar_select %p54_p5, %s1285_s26, %s56_s8  }
  0x16   : > { %p1403_p7 = pnand %p1029_p6, %p65_p3  ;;  %s954_s15 = sshll.u32 %s1395_s10, 4 }
  0x17   : > { %1815 = sst [smem:[#allocation20_spill]] %s1401_s12  ;;  %s1817_s1 = sld [smem:[#allocation22_spill]] }
  0x18   : > { %s1816_s13 = scalar_select %p1403_p7, 1, 0 }
  0x19   : > { %s319_s19 = scalar_lea.vmem [#allocation5], %s954_s15  ;;  %s1417_s21 = scalar_lea.sflag [#allocation6], %s315_s14 }
  0x1a   : > { %s328_s20 = sshll.u32 %s319_s19, 4  ;;  %p1423_p9 = pneg %p1403_p7  ;;  %s1415_s20 = int_to_ptr.vmem [resolvable:$true] %s328_s20 }
  0x1c   : > { %s1818_s23 = scalar_select %p1423_p9, 1, 0 }
  0x1d   : > { %s1413_s18 = scalar_lea.hbm %s1817_s1, %s1398_s11  ;;  %s1094_s15 = scalar_lea.hbm %s1817_s1, 512 }
  0x1e   : > { %s1089_s22 = scalar_lea.hbm %s1413_s18, 256  ;;  %p1095_p12 = scmp.lt.u32.totalorder %s1413_s18, %s1817_s1 }
  0x1f   : > { %p1090_p8 = scmp.ne.s32.totalorder %s1413_s18, %s1089_s22  ;;  %p1096_p13 = scmp.lt.u32.totalorder %s1094_s15, %s1089_s22 }
  0x20   : > { %p1098_p2 = scmp.lt.u32.totalorder %s1089_s22, %s1413_s18 }
  0x21   : > { %p1092_p10 = pnand %p1423_p9, %p1090_p8  ;;  %p1097_p0 = por %p1096_p13, %p1095_p12 }
  0x23   : > { %p1093_p11 = pneg %p1092_p10  ;;  %p1099_p3 = por %p1098_p2, %p1097_p0 }
  0x25   : > { %p1100_p5 = pnand %p1099_p3, %p1093_p11 }
  0x27   : > { %1103 = shalt.err (!%p1100_p5)
}
  0x28   : > { %s1104_s14 = scalar_lea.vmem %s1415_s20, 256  ;;  %s1299_s19 = smov [#allocation5]  }
  0x29   : > { %p1105_p6 = scmp.ne.s32.totalorder %s1415_s20, %s1104_s14  ;;  %s1109_s8 = sshll.u32 %s1299_s19, 4  ;;  %s1110_s8 = int_to_ptr.vmem [resolvable:$false] %s1109_s8 }
  0x2a   : > { %s1111_s9 = scalar_lea.vmem %s1110_s8, 512  ;;  %p1112_p4 = scmp.lt.s32.totalorder %s1415_s20, %s1110_s8 }
  0x2b   : > { %p1107_p8 = pnand %p1105_p6, %p1423_p9  ;;  %p1113_p1 = scmp.lt.s32.totalorder %s1111_s9, %s1104_s14 }
  0x2d   : > { %p1108_p10 = pneg %p1107_p8  ;;  %p1114_p12 = por %p1113_p1, %p1112_p4 }
  0x2f   : > { %p1115_p13 = pnand %p1114_p12, %p1108_p10 }
  0x31   : > { %1118 = shalt.err (!%p1115_p13)
}
  0x32   : > { %s1789_s22 = smov 128   ;;  %s1790_s15 = smov 8  }
  0x33   : > { %1020 = dma.hbm_to_vmem [thread:$0]  (!%p1403_p7), %s1413_s18, 256, %s1415_s20, %s1417_s21, %s1789_s22, %s1789_s22, %s1790_s15  }
  0x34   : > { %s1451_s16 = sadd.s32 4294967295, %s1297_s29   ;;  %s947_s17 = sadd.s32 4294967294, %s1297_s29  }
  0x35   : > { %p69_p1 = scmp.ne.s32.totalorder %s1281_s25, %s1277_s24  ;;  %p1799_p4 = scmp.eq.s32.totalorder %s1451_s16, 0 }
  0x36   : > { %p243_p11 = scmp.eq.s32.totalorder %s1451_s16, 1  ;;  %p249_p0 = scmp.eq.s32.totalorder %s947_s17, 1 }
  0x37   : > { %p948_p2 = scmp.ge.s32.totalorder %s1297_s29, 1  ;;  %p1461_p3 = por %p1799_p4, %p69_p1 }
  0x38   : > { %p1820_p5 = scmp.ne.s32.totalorder %s1285_s26, %s1281_s25  ;;  %p1472_p8 = por %p249_p0, %p69_p1 }
  0x39   : > { %s1819_s14 = scalar_select %p1461_p3, 1, 0 }
  0x3a   : > { %p1468_p6 = por %p243_p11, %p1820_p5  ;;  %p256_p10 = scmp.lt.s32.totalorder %s1297_s29, 3 }
  0x3b   : > { %s1822_s20 = scalar_select %p1472_p8, 1, 0 }
  0x3c   : > { %s1821_s18 = scalar_select %p1468_p6, 1, 0 }
  0x3d   : > { %1823 = sst [smem:[#allocation21_spill]] %s1822_s20  ;;  %p1477_p12 = pnand %p948_p2, %p256_p10 }
  0x3e   : > { %s1302_s8 = smov [#allocation8]   ;;  %s1807_s17 = sshll.u32 %s1395_s10, 2 }
  0x3f   : > { %s1824_s19 = scalar_select %p1477_p12, 1, 0 }
  0x40   : > { %s268_s9 = sshll.u32 %s1302_s8, 4  ;;  %p1010_p13 = pneg %p1477_p12  ;;  %s1481_s9 = int_to_ptr.vmem [resolvable:$true] %s268_s9 }
  0x41   : > { %s1490_s1 = scalar_lea.hbm %s1780_s0, %s1398_s11  ;;  %s295_s28 = scalar_lea.vmem [#allocation2], %s1807_s17 }
  0x42   : > { %p1494_p1 = pnand %p1010_p13, %p1799_p4  ;;  %s308_s12 = sshll.u32 %s295_s28, 4  ;;  %s1500_s12 = int_to_ptr.vmem [resolvable:$true] %s308_s12 }
  0x43   : > { %s1119_s20 = scalar_lea.hbm %s1783_s3, 256 }
  0x44   : > { %p1120_p11 = scmp.ne.s32.totalorder %s1783_s3, %s1119_s20  ;;  %p1121_p0 = pneg %p1494_p1 }
  0x45   : > { %p1126_p10 = scmp.lt.u32.totalorder %s1119_s20, %s1783_s3 }
  0x46   : > { %p1122_p2 = pnand %p1121_p0, %p1120_p11 }
  0x48   : > { %p1123_p5 = pneg %p1122_p2 }
  0x4a   : > { %p1128_p13 = pnand %p1126_p10, %p1123_p5 }
  0x4c   : > { %1131 = shalt.err (!%p1128_p13)
}
  0x4d   : > { %s1132_s28 = scalar_lea.vmem %s1481_s9, 256  ;;  %p1140_p3 = scmp.lt.s32.totalorder %s1481_s9, %s1481_s9 }
  0x4e   : > { %p1133_p4 = scmp.ne.s32.totalorder %s1481_s9, %s1132_s28  ;;  %p1141_p12 = scmp.lt.s32.totalorder %s1132_s28, %s1132_s28 }
  0x50   : > { %p1135_p8 = pnand %p1133_p4, %p1121_p0  ;;  %p1142_p7 = por %p1141_p12, %p1140_p3 }
  0x52   : > { %p1136_p6 = pneg %p1135_p8 }
  0x54   : > { %p1143_p9 = pnand %p1142_p7, %p1136_p6 }
  0x56   : > { %1146 = shalt.err (!%p1143_p9)
}
  0x57   : > { %s1826_s24 = smov 8   ;;  %s1827_s7 = smov 128  }
  0x58   : > { %1013 = dma.hbm_to_vmem [thread:$0]  (!%p1494_p1), %s1783_s3, 256, %s1481_s9, [#allocation9], %s1827_s7, %s1827_s7, %s1826_s24  }
  0x59   : > { %s292_s20 = scalar_lea.sflag [#allocation3], %s1395_s10  ;;  %s1147_s22 = scalar_lea.hbm %s1490_s1, 64 }
  0x5a   : > { %p1148_p7 = scmp.ne.s32.totalorder %s1490_s1, %s1147_s22  ;;  %p1828_p9 = scmp.ne.s32.totalorder %s1818_s23, 0 }
  0x5b   : > { %s1152_s28 = scalar_lea.hbm %s1780_s0, 512  ;;  %p1153_p6 = scmp.lt.u32.totalorder %s1490_s1, %s1780_s0 }
  0x5c   : > { %p1150_p4 = pnand %p1148_p7, %p1828_p9  ;;  %p1154_p8 = scmp.lt.u32.totalorder %s1152_s28, %s1147_s22 }
  0x5d   : > { %p1156_p11 = scmp.lt.u32.totalorder %s1147_s22, %s1490_s1 }
  0x5e   : > { %p1151_p3 = pneg %p1150_p4  ;;  %p1155_p12 = por %p1154_p8, %p1153_p6 }
  0x60   : > { %p1157_p0 = por %p1156_p11, %p1155_p12 }
  0x62   : > { %p1158_p2 = pnand %p1157_p0, %p1151_p3 }
  0x64   : > { %1161 = shalt.err (!%p1158_p2)
}
  0x65   : > { %s1162_s9 = scalar_lea.vmem %s1500_s12, 64  ;;  %s1303_s24 = smov [#allocation2]  }
  0x66   : > { %p1163_p1 = scmp.ne.s32.totalorder %s1500_s12, %s1162_s9  ;;  %s1167_s7 = sshll.u32 %s1303_s24, 4  ;;  %s1168_s7 = int_to_ptr.vmem [resolvable:$false] %s1167_s7 }
  0x67   : > { %s1169_s17 = scalar_lea.vmem %s1168_s7, 128  ;;  %p1170_p13 = scmp.lt.s32.totalorder %s1500_s12, %s1168_s7 }
  0x68   : > { %p1165_p5 = pnand %p1163_p1, %p1828_p9  ;;  %p1171_p7 = scmp.lt.s32.totalorder %s1169_s17, %s1162_s9 }
  0x6a   : > { %p1166_p10 = pneg %p1165_p5  ;;  %p1172_p4 = por %p1171_p7, %p1170_p13 }
  0x6c   : > { %p1173_p6 = pnand %p1172_p4, %p1166_p10 }
  0x6e   : > { %1176 = shalt.err (!%p1173_p6)
}
  0x6f   : > { %p1829_p3 = scmp.ne.s32.totalorder %s1816_s13, 0  ;;  %s1830_s8 = sadd.s32 192, %s1398_s11 }
  0x70   : > { %s1554_s22 = scalar_lea.hbm %s1782_s2, %s1830_s8  ;;  %s1831_s30 = sshll.u32 %s1395_s10, 2 }
  0x71   : > { %1017 = dma.hbm_to_vmem [thread:$0]  (!%p1829_p3), %s1490_s1, 64, %s1500_s12, %s292_s20  }
  0x72   : > { %s342_s15 = scalar_lea.vmem [#allocation7], %s1831_s30  ;;  %s1177_s9 = scalar_lea.hbm %s1554_s22, 64 }
  0x73   : > { %s355_s28 = sshll.u32 %s342_s15, 4  ;;  %p1178_p8 = scmp.ne.s32.totalorder %s1554_s22, %s1177_s9  ;;  %s356_s28 = int_to_ptr.vmem [resolvable:$true] %s355_s28 }
  0x74   : > { %s1182_s12 = scalar_lea.hbm %s1782_s2, 512  ;;  %p1183_p0 = scmp.lt.u32.totalorder %s1554_s22, %s1782_s2 }
  0x75   : > { %p1180_p12 = pnand %p1178_p8, %p1828_p9  ;;  %p1184_p2 = scmp.lt.u32.totalorder %s1182_s12, %s1177_s9 }
  0x76   : > { %p1186_p5 = scmp.lt.u32.totalorder %s1177_s9, %s1554_s22 }
  0x77   : > { %p1181_p11 = pneg %p1180_p12  ;;  %p1185_p1 = por %p1184_p2, %p1183_p0 }
  0x79   : > { %p1187_p10 = por %p1186_p5, %p1185_p1 }
  0x7b   : > { %p1188_p13 = pnand %p1187_p10, %p1181_p11 }
  0x7d   : > { %1191 = shalt.err (!%p1188_p13)
}
  0x7e   : > { %s1192_s10 = scalar_lea.vmem %s356_s28, 64  ;;  %s1304_s7 = smov [#allocation7]  }
  0x7f   : > { %p1193_p7 = scmp.ne.s32.totalorder %s356_s28, %s1192_s10  ;;  %s1197_s17 = sshll.u32 %s1304_s7, 4  ;;  %s1198_s17 = int_to_ptr.vmem [resolvable:$false] %s1197_s17 }
  0x80   : > { %s1199_s8 = scalar_lea.vmem %s1198_s17, 128  ;;  %p1200_p8 = scmp.lt.s32.totalorder %s356_s28, %s1198_s17 }
  0x81   : > { %p1195_p4 = pnand %p1193_p7, %p1828_p9  ;;  %p1201_p12 = scmp.lt.s32.totalorder %s1199_s8, %s1192_s10 }
  0x83   : > { %p1196_p6 = pneg %p1195_p4  ;;  %p1202_p3 = por %p1201_p12, %p1200_p8 }
  0x85   : > { %p1203_p0 = pnand %p1202_p3, %p1196_p6 }
  0x87   : > { %1206 = shalt.err (!%p1203_p0)
}
  0x88   : > { %p1832_p2 = scmp.ne.s32.totalorder %s1816_s13, 0  ;;  %p1833_p11 = scmp.ne.s32.totalorder %s1824_s19, 0 }
  0x89   : > { %s1579_s23 = sand.u32 (!%p1833_p11), 1, %s1281_s25   ;;  %p1834_p9 = scmp.ne.s32.totalorder (!%p1833_p11), %s1819_s14, 0 }
  0x8a   : > { %1023 = dma.hbm_to_vmem [thread:$0]  (!%p1832_p2), %s1554_s22, 64, %s356_s28, %s1417_s21  }
  0x8b   : > { %364 = sbr.rel (%p1833_p11) target bundleno = 430 (0x1ae), region = 48  ;;  %s961_s26 = sshll.u32 (!%p1833_p11), %s1579_s23, 2 }
  0x8c   : > { %s367_s29 = scalar_lea.sflag (!%p1833_p11), [#allocation3], %s1579_s23  ;;  %s1583_s30 = scalar_lea.vmem (!%p1833_p11), [#allocation2], %s961_s26 }
  0x92   : > { %1260 = dma.done.wait (%p1834_p9), %s367_s29, 64  }
  0x93   : > { %1262 = vsyncadd (%p1834_p9), %s367_s29, 4294967232  ;;  %s375_s13 = sand.u32 1, %s1451_s16   ;;  %s962_s21 = sshll.u32 %s1579_s23, 4 }
  0x94   : > { %s376_s19 = scalar_lea.sflag [#allocation6], %s375_s13  ;;  %s1593_s22 = scalar_lea.vmem [#allocation5], %s962_s21 }
  0x95   : > { %1264 = dma.done.wait (%p1834_p9), %s376_s19, 320  }
  0x96   : > { %1266 = vsyncadd (%p1834_p9), %s376_s19, 4294966976  ;;  %s388_s15 = scalar_lea.vmem [#allocation7], %s961_s26  ;;  %p1835_p3 = scmp.eq.s32.totalorder %s1451_s16, 0 }
  0x98   : > { %1268 = dma.done.wait (%p1835_p3), [#allocation9], 256   ;;  %p1836_p1 = pmov %p1835_p3 }
  0x99   : > { %v1305_v0 = vmov 0.0   ;;  %vm1306_vm0 = vmmov 0   ;;  %v473_v1 = vlaneseq  ;;  %vm458_vm1 = vcmask 1044480   ;;  %v1087_v11 = vld [vmem:[%s1785_s5] sm:$0xff]   ;;  %v1088_v13 = vld [vmem:[%s1785_s5 + $0x8] sm:$0xff]   ;;  %v1624_v22 = vld [vmem:[#allocation8] sm:$0xff] }
  0x9a   : > { %1270 = vsyncadd (%p1836_p1), [#allocation9], 4294967040  ;;  %990 = vmatprep.subr.bf16.mxu0 %v1305_v0  ;;  %994 = vmatprep.mubr.msk.bf16.mxu0 %vm1306_vm0, %v1305_v0  ;;  %vm468_vm2 = vcmask 1040384   ;;  %vm534_vm4 = vcmask 1046528   ;;  %v446_v14 = vld [vmem:[%s1583_s30] sm:$0xf] }
  0x9b   : > { %v1603_v2 = vshrl.u32 %v473_v1, 7  ;;  %991 = vmatpush3.bf16.msra.mxu0 %v1087_v11  ;;  %v449_v15 = vld [vmem:[%s388_s15] sm:$0xf]  ;;  %vm553_vm6 = vcmask 1041408   ;;  %v448_v17 = vmul.f32 0.0, %v446_v14  ;;  %v452_v19 = vld [vmem:[%s1593_s22 + $0x8] sm:$0xff] }
  0x9c   : > { %v451_v16 = vld [vmem:[%s1593_s22] sm:$0xff]  ;;  %992 = vmatprep.subr.bf16.mxu0 %v1305_v0  ;;  %v450_v18 = vmul.f32 0.0, %v449_v15  ;;  %v460_v23 = vrot.slane %v452_v19, 3  ;;  %vm585_vm9 = vcmask 1043456   ;;  %vm566_vm10 = vcmask 1045504   ;;  %s432_s24 = scalar_lea.vmem [#allocation10], %s962_s21 }
  0x9d   : > { %v475_v3 = vadd.s32 8, %v1603_v2  ;;  %v480_v4 = vand.u32 3, %v1603_v2  ;;  %v516_v5 = vsub.s32 0, %v1603_v2  ;;  %v526_v6 = vsub.s32 1, %v1603_v2  ;;  %s802_s10 = sshll.u32 %s432_s24, 4  ;;  %s985_s7 = sshll.u32 %s1289_s27, 8  ;;  %s1726_s10 = int_to_ptr.vmem [resolvable:$true] %s802_s10 }
  0x9e   : > { %v546_v7 = vsub.s32 2, %v1603_v2  ;;  %v578_v8 = vsub.s32 3, %v1603_v2  ;;  %v609_v9 = vsub.s32 4, %v1603_v2  ;;  %v629_v10 = vsub.s32 5, %v1603_v2  ;;  %s1837_s26 = sld [smem:[#allocation23_spill]]  ;;  %s787_s13 = scalar_lea.sflag [#allocation4], %s1579_s23 }
  0x9f   : > { %v487_v12 = vand.u32 3, %v475_v3  ;;  %vm500_vm3 = vcmp.gt.s32.totalorder %v480_v4, 0  ;;  %v459_v20 = vrot.slane %v451_v16, 3  ;;  %vm506_vm7 = vcmp.lt.s32.totalorder %v480_v4, 3  ;;  %993 = vmatpush3.bf16.msra.mxu0 %v1088_v13  ;;  %s1207_s27 = scalar_lea.vmem %s1726_s10, 256  ;;  %p1839_p10 = scmp.ne.s32.totalorder %s1821_s18, 0 }
  0xa0   : > { %v1622_v21 = vsel %vm500_vm3, 1.0, %v1305_v0  ;;  %v454_v25 = vrot.slane %v448_v17, 7  ;;  %v466_v26 = vrot.slane %v450_v18, 3  ;;  %v1628_v27 = vsel %vm506_vm7, 1.0, %v1305_v0  ;;  %p1208_p5 = scmp.ne.s32.totalorder %s1726_s10, %s1207_s27  ;;  %s1307_s21 = smov [#allocation10]  }
  0xa1   : > { %vm501_vm5 = vcmp.gt.s32.totalorder %v487_v12, 0  ;;  %vm507_vm8 = vcmp.lt.s32.totalorder %v487_v12, 3  ;;  %v1633_v29 = vsel %vm458_vm1, %v459_v20, %v460_v23  ;;  %v517_v30 = vrot.slane %v1624_v22, %v516_v5  ;;  %s1211_s19 = sshll.u32 %s1307_s21, 4  ;;  %s1212_s19 = int_to_ptr.vmem [resolvable:$false] %s1211_s19 }
  0xa2   : > { %v1626_v24 = vsel %vm501_vm5, 1.0, %v1305_v0  ;;  %v1630_v28 = vsel %vm507_vm8, 1.0, %v1305_v0  ;;  %v527_v31 = vrot.slane %v1624_v22, %v526_v6  ;;  %v547_v32 = vrot.slane %v1624_v22, %v546_v7  ;;  %p1209_p13 = pnand %p1208_p5, %p1839_p10  ;;  %s1213_s22 = scalar_lea.vmem %s1212_s19, 512 }
  0xa3   : > { %v469_v33 = vsel %vm468_vm2, 0.0, %v454_v25  ;;  %v1640_v34 = vsel %vm458_vm1, %v460_v23, %v466_v26  ;;  %v1643_v35 = vsel %vm468_vm2, %v466_v26, 0.0  ;;  %v1646_v36 = vrot.slane %v1628_v27, 6  ;;  %p1214_p4 = scmp.lt.s32.totalorder %s1726_s10, %s1212_s19  ;;  %p1215_p6 = scmp.lt.s32.totalorder %s1213_s22, %s1207_s27 }
  0xa4   : > { %v470_v37 = vsel %vm458_vm1, %v469_v33, %v459_v20  ;;  %v519_v38 = vmul.f32 %v517_v30, %v1633_v29  ;;  %v529_v39 = vmul.f32 %v527_v31, %v1633_v29  ;;  %v530_v40 = vmul.f32 %v527_v31, %v1640_v34  ;;  %s1838_s30 = smov %s1837_s26  ;;  %s1731_s29 = scalar_lea.hbm %s1837_s26, %s985_s7 }
  0xa5   : > { %v518_v41 = vmul.f32 %v517_v30, %v470_v37  ;;  %v528_v42 = vmul.f32 %v527_v31, %v470_v37  ;;  %v548_v43 = vmul.f32 %v547_v32, %v470_v37  ;;  %v549_v44 = vmul.f32 %v547_v32, %v1633_v29  ;;  %p1210_p7 = pneg %p1209_p13  ;;  %p1216_p8 = por %p1215_p6, %p1214_p4 }
  0xa6   : > { %v521_v45 = vmul.f32 %v1626_v24, %v519_v38  ;;  %v536_v46 = vrot.slane %v529_v39, 1  ;;  %v538_v47 = vrot.slane %v530_v40, 1  ;;  %v550_v48 = vmul.f32 %v547_v32, %v1640_v34 }
  0xa7   : > { %v520_v49 = vmul.f32 %v1622_v21, %v518_v41  ;;  %v535_v50 = vrot.slane %v528_v42, 1  ;;  %v1657_v51 = vrot.slane %v1630_v28, 6  ;;  %v560_v52 = vmul.f32 %v1646_v36, %v548_v43  ;;  %v970_v42 = vld [vmem:[#allocation8 + $0x8] ss:$0 sm:$0xff]  ;;  %p1217_p12 = pnand %p1216_p8, %p1210_p7 }
  0xa8   : > { %v539_v53 = vsel %vm534_vm4, %v536_v46, %v538_v47  ;;  %v579_v54 = vrot.slane %v1624_v22, %v578_v8  ;;  %v586_v55 = vrot.slane %v1622_v21, 4  ;;  %v587_v56 = vrot.slane %v1626_v24, 4 }
  0xa9   : > { %v537_v57 = vsel %vm534_vm4, %v535_v50, %v536_v46  ;;  %v543_v58 = vadd.f32 %v539_v53, %v521_v45  ;;  %v1668_v59 = vsel %vm553_vm6, %v1646_v36, %v1657_v51  ;;  %v562_v60 = vmul.f32 %v1657_v51, %v550_v48 }
  0xaa   : > { %vm617_vm11 = vcmask 1042432   ;;  %v542_v61 = vadd.f32 %v537_v57, %v520_v49  ;;  %v561_v62 = vmul.f32 %v1668_v59, %v549_v44  ;;  %v567_v63 = vrot.slane %v560_v52, 2 }
  0xab   : > { %v580_v0 = vmul.f32 %v579_v54, %v470_v37  ;;  %v570_v1 = vrot.slane %v562_v60, 2  ;;  %v581_v3 = vmul.f32 %v579_v54, %v1633_v29  ;;  %v582_v4 = vmul.f32 %v579_v54, %v1640_v34 }
  0xac   : > { %v588_v5 = vsel %vm585_vm9, %v586_v55, %v587_v56  ;;  %v568_v6 = vrot.slane %v561_v62, 2  ;;  %v610_v8 = vrot.slane %v1624_v22, %v609_v9  ;;  %v630_v11 = vrot.slane %v1624_v22, %v629_v10 }
  0xad   : > { %v592_v7 = vmul.f32 %v586_v55, %v580_v0  ;;  %v593_v12 = vmul.f32 %v588_v5, %v581_v3  ;;  %v594_v13 = vmul.f32 %v587_v56, %v582_v4  ;;  %v634_v14 = vrot.slane %v1628_v27, 2 }
  0xae   : > { %v635_v15 = vrot.slane %v1630_v28, 2  ;;  %v569_v16 = vsel %vm566_vm10, %v567_v63, %v568_v6  ;;  %v571_v17 = vsel %vm566_vm10, %v568_v6, %v570_v1  ;;  %v611_v19 = vmul.f32 %v610_v8, %v470_v37 }
  0xaf   : > { %v598_v18 = vrot.slane %v592_v7, 4  ;;  %v574_v20 = vadd.f32 %v569_v16, %v542_v61  ;;  %v575_v23 = vadd.f32 %v571_v17, %v543_v58  ;;  %v599_v25 = vrot.slane %v593_v12, 4 }
  0xb0   : > { %v601_v9 = vrot.slane %v594_v13, 4  ;;  %v612_v26 = vmul.f32 %v610_v8, %v1633_v29  ;;  %v613_v10 = vmul.f32 %v610_v8, %v1640_v34  ;;  %v618_v30 = vrot.slane %v611_v19, 5 }
  0xb1   : > { %v631_v31 = vmul.f32 %v630_v11, %v470_v37  ;;  %v600_v27 = vsel %vm585_vm9, %v598_v18, %v599_v25  ;;  %v632_v32 = vmul.f32 %v630_v11, %v1633_v29  ;;  %v633_v33 = vmul.f32 %v630_v11, %v1640_v34 }
  0xb2   : > { %v602_v28 = vsel %vm585_vm9, %v599_v25, %v601_v9  ;;  %v605_v38 = vadd.f32 %v600_v27, %v574_v20  ;;  %v619_v40 = vrot.slane %v612_v26, 5  ;;  %v621_v41 = vrot.slane %v613_v10, 5  ;;  %v972_v10 = vld [vmem:[%s1786_s6] ss:$0 sm:$0xff] }
  0xb3   : > { %v606_v39 = vadd.f32 %v602_v28, %v575_v23  ;;  %v636_v43 = vsel %vm566_vm10, %v634_v14, %v635_v15  ;;  %v640_v44 = vmul.f32 %v634_v14, %v631_v31  ;;  %v642_v45 = vmul.f32 %v635_v15, %v633_v33 }
  0xb4   : > { %v657_v46 = vsub.s32 6, %v1603_v2  ;;  %v620_v37 = vsel %vm617_vm11, %v618_v30, %v619_v40  ;;  %v622_v47 = vsel %vm617_vm11, %v619_v40, %v621_v41  ;;  %v641_v48 = vmul.f32 %v636_v43, %v632_v32 }
  0xb5   : > { %v667_v49 = vsub.s32 7, %v1603_v2  ;;  %v625_v50 = vadd.f32 %v620_v37, %v605_v38  ;;  %v626_v52 = vadd.f32 %v622_v47, %v606_v39  ;;  %v646_v53 = vrot.slane %v640_v44, 6 }
  0xb6   : > { %v649_v54 = vrot.slane %v642_v45, 6  ;;  %v647_v55 = vrot.slane %v641_v48, 6  ;;  %v658_v56 = vrot.slane %v1624_v22, %v657_v46  ;;  %v688_v58 = vmul.f32 %v970_v42, %v1633_v29 }
  0xb7   : > { %v668_v57 = vrot.slane %v1624_v22, %v667_v49  ;;  %v689_v60 = vmul.f32 %v970_v42, %v1640_v34  ;;  %v690_v61 = vmul.f32 %v970_v42, %v1643_v35  ;;  %vm739_vm12 = vcmask 261120  }
  0xb8   : > { %v648_v62 = vsel %vm553_vm6, %v646_v53, %v647_v55  ;;  %v650_v63 = vsel %vm553_vm6, %v647_v55, %v649_v54  ;;  %v659_v2 = vmul.f32 %v658_v56, %v1633_v29  ;;  %v660_v0 = vmul.f32 %v658_v56, %v1640_v34 }
  0xb9   : > { %v653_v1 = vadd.f32 %v648_v62, %v625_v50  ;;  %v654_v3 = vadd.f32 %v650_v63, %v626_v52  ;;  %v669_v4 = vmul.f32 %v668_v57, %v1633_v29  ;;  %v670_v22 = vmul.f32 %v668_v57, %v1640_v34 }
  0xba   : > { %v661_v5 = vmul.f32 %v1622_v21, %v659_v2  ;;  %v662_v6 = vmul.f32 %v1626_v24, %v660_v0  ;;  %v671_v7 = vmul.f32 %v668_v57, %v1643_v35  ;;  %v691_v8 = vmul.f32 %v688_v58, %v1646_v36 }
  0xbb   : > { %v675_v11 = vrot.slane %v669_v4, 1  ;;  %v676_v12 = vrot.slane %v670_v22, 1  ;;  %v692_v13 = vmul.f32 %v689_v60, %v1668_v59  ;;  %v693_v14 = vmul.f32 %v690_v61, %v1657_v51  ;;  %v971_v51 = vld [vmem:[%s1784_s4] ss:$0 sm:$0xff] }
  0xbc   : > { %v663_v15 = vadd.f32 %v661_v5, %v653_v1  ;;  %v664_v16 = vadd.f32 %v662_v6, %v654_v3  ;;  %v678_v17 = vrot.slane %v671_v7, 1  ;;  %v697_v29 = vrot.slane %v691_v8, 2 }
  0xbd   : > { %v677_v34 = vsel %vm534_vm4, %v675_v11, %v676_v12  ;;  %v698_v18 = vrot.slane %v692_v13, 2  ;;  %v700_v21 = vrot.slane %v693_v14, 2 }
  0xbe   : > { %v679_v24 = vsel %vm534_vm4, %v676_v12, %v678_v17  ;;  %v682_v35 = vadd.f32 %v677_v34, %v663_v15 }
  0xbf   : > { %v683_v36 = vadd.f32 %v679_v24, %v664_v16  ;;  %v699_v19 = vsel %vm566_vm10, %v697_v29, %v698_v18  ;;  %v701_v59 = vsel %vm566_vm10, %v698_v18, %v700_v21 }
  0xc0   : > { %v704_v20 = vadd.f32 %v699_v19, %v682_v35 }
  0xc1   : > { %v705_v23 = vadd.f32 %v701_v59, %v683_v36 }
  0xc2   : > { %v713_v25 = vadd.f32 %v971_v51, %v704_v20 }
  0xc3   : > { %v714_v9 = vadd.f32 %v971_v51, %v705_v23 }
  0xc5   : > { %v715_v26 = vpack.c.bf16 %v714_v9, %v713_v25 }
  0xc7   : > { %995 = vmatmul.mubr.msk.bf16.vlgmr.msra.gmra.mrb[0].mxu0 %vm739_vm12, %v715_v26 }
 0x19a   : > { %v777_v30 = vpop.f32.mrb[0].mxu0 }
 0x19b   : > { %v778_v31 = vadd.f32 %v972_v10, %v777_v30  ;;  %v996_v27 = vpop.f32.mrb[1].mxu0 }
 0x19c   : > { %v780_v28 = vpop.f32.mrb[2].mxu0 }
 0x19d   : > { %784 = vst [vmem:[%s432_s24] sm:$0xff] %v778_v31  ;;  %v781_v32 = vadd.f32 %v972_v10, %v780_v28  ;;  %v997_v33 = vpop.f32.mrb[3].mxu0 }
 0x19f   : > { %785 = vst [vmem:[%s432_s24 + $0x8] sm:$0xff] %v781_v32 }
 0x1a0   : > { %1220 = shalt.err (!%p1217_p12)
}
 0x1a1   : > { %s1221_s15 = scalar_lea.hbm %s1731_s29, 256  ;;  %s1225_s28 = scalar_lea.hbm %s1838_s30, 512 }
 0x1a2   : > { %p1222_p0 = scmp.ne.s32.totalorder %s1731_s29, %s1221_s15  ;;  %p1226_p9 = scmp.lt.u32.totalorder %s1731_s29, %s1838_s30 }
 0x1a3   : > { %p1227_p3 = scmp.lt.u32.totalorder %s1225_s28, %s1221_s15  ;;  %p1229_p5 = scmp.lt.u32.totalorder %s1221_s15, %s1731_s29 }
 0x1a4   : > { %p1223_p2 = pnand %p1222_p0, %p1839_p10 }
 0x1a5   : > { %p1228_p1 = por %p1227_p3, %p1226_p9 }
 0x1a6   : > { %p1224_p11 = pneg %p1223_p2 }
 0x1a7   : > { %p1230_p13 = por %p1229_p5, %p1228_p1 }
 0x1a9   : > { %p1231_p7 = pnand %p1230_p13, %p1224_p11 }
 0x1ab   : > { %1234 = shalt.err (!%p1231_p7)
}
 0x1ac   : > { %s1308_s11 = smov 128   ;;  %s1309_s12 = smov 8  }
 0x1ad   : > { %1008 = dma.vmem_to_hbm [thread:$0]  (%p1839_p10), %s1726_s10, 256, %s1731_s29, %s787_s13, %s1308_s11, %s1308_s11, %s1309_s12  }
 0x1ae PF: > { %s1840_s20 = sld [smem:[#allocation15_spill]]  ;;  %s1841_s24 = sld [smem:[#allocation21_spill]] }
 0x1af   : > { %s1842_s7 = sld [smem:[#allocation18_spill]] }
 0x1b4   : > { %s817_s17 = sand.u32 1, %s1840_s20   ;;  %p1843_p4 = scmp.ne.s32.totalorder %s1841_s24, 0 }
 0x1b5   : > { %p1844_p6 = scmp.ge.s32.totalorder %s1842_s7, 2  ;;  %s818_s8 = scalar_lea.sflag [#allocation4], %s817_s17 }
 0x1b7   : > { %p1025_p8 = pnand %p1844_p6, %p1843_p4 }
 0x1b9   : > { %1272 = dma.done.wait (!%p1025_p8), %s818_s8, 256  }
 0x1ba   : > { %1274 = vsyncadd (!%p1025_p8), %s818_s8, 4294967040  ;;  %s27_s29 = sadd.s32 1, %s1842_s7   ;;  %s1845_s26 = sld [smem:[#allocation16_spill]] }
 0x1bb   : > { %p24_p12 = scmp.ge.s32.totalorder %s27_s29, 4   ;;  %s1846_s27 = sld [smem:[#allocation20_spill]] }
 0x1bc   : > { %s1847_s18 = sld [smem:[#allocation17_spill]]  ;;  %s1848_s28 = sld [smem:[#allocation19_spill]] }
 0x1bd   : > { %s1849_s24 = smov %s1281_s25  ;;  %26 = sbr.rel (!%p24_p12) target bundleno = 12 (0xc), region = 121 }
 0x1c0   : > { %s1850_s25 = smov %s1845_s26 }
 0x1c1   : > { %s1851_s26 = smov %s1846_s27 }
 0x1c2   : > { %s1852_s27 = smov %s1847_s18 }
 0x1c4   :  { %823 = vsyncpa [#allocation3], 1 }
 0x1c5   :  { %825 = vsyncpa [#allocation3 + $0x1], 1 }
 0x1c6   :  { %826 = vsyncpa [#allocation6], 1 }
 0x1c7   :  { %828 = vsyncpa [#allocation6 + $0x1], 1 }
 0x1c8   :  { %829 = vsyncpa [#allocation9], 1 }
 0x1c9   :  { %830 = vsyncpa [#allocation4], 1 }
 0x1ca   :  { %832 = vsyncpa [#allocation4 + $0x1], 1 }

</bundles_post_ra>
